<compile_context>
chip_gen: v7x
topology: tpu7x:2x2x1
jax: 0.10.0
libtpu: 0.0.40
codegen_flags: <defaults>
</compile_context>

<pallas_src>
import functools

import jax
import jax.numpy as jnp
from jax import lax
from jax.experimental import pallas as pl
from jax.experimental.pallas import tpu as pltpu

LANE = 128  # lane-pad the tiny label dim so the output store is an unmasked vst


# ----------------------------- one-time parameter preparation ------------------------------
def prepare_params(raw):
    """Fuse / transpose / pad the PyTorch-layout parameters once (not per forward call)."""
    H = raw["w_hh"].shape[1]
    L = raw["w_label"].shape[0]
    E = raw["w_ih"].shape[1]
    # PyTorch GRU: w_ih (3H, E), w_hh (3H, H), rows ordered [r; z; n].  Fused, transposed:
    wi_f = jnp.transpose(raw["w_ih"]).astype(jnp.float32)          # (E, 3H)
    wh_f = jnp.transpose(raw["w_hh"]).astype(jnp.float32)          # (H, 3H)
    bi_f = raw["b_ih"].reshape(1, 3 * H).astype(jnp.float32)       # (1, 3H)
    bh_f = raw["b_hh"].reshape(1, 3 * H).astype(jnp.float32)       # (1, 3H)
    # Label head: transpose to (E, L) and pad the label lanes to 128 for a lane-dense store.
    wl_pad = jnp.zeros((E, LANE), jnp.float32).at[:, :L].set(jnp.transpose(raw["w_label"]))
    bl_pad = jnp.zeros((1, LANE), jnp.float32).at[:, :L].set(raw["b_label"])
    return {
        "embedding": raw["embedding"].astype(jnp.float32),
        "wi_f": wi_f, "wh_f": wh_f, "bi_f": bi_f, "bh_f": bh_f,
        "wl_pad": wl_pad, "bl_pad": bl_pad,
        "label_size": L, "hidden_dim": H,
    }


# ------------------------------------ in-kernel helpers ------------------------------------
def _gather_bt(ids_ref, emb_ref):
    """In-kernel embedding gather via a one-hot MXU matmul.

    ids_ref: (B*S, 1) int32 token ids in batch-major row order (row = b*S + t).
    emb_ref: (V, E) embedding table (VMEM).
    Returns x_bt: (B*S, E) float32, kept in vregs.
    """
    R = ids_ref.shape[0]
    V = emb_ref.shape[0]
    onehot = (ids_ref[...] == lax.broadcasted_iota(jnp.int32, (R, V), 1)).astype(jnp.float32)
    return jnp.dot(onehot, emb_ref[...], preferred_element_type=jnp.float32)


def _head_from_x(x_bt, S, B, wl_ref, bl_ref, y_ref):
    """tanh(max over batch) @ Wl + bl.  tanh(max(.)) == max(tanh(.)) (tanh monotonic), but this
    order does 1/B of the EUP tanh work and the max is a pure-VPU maximum of aligned slabs."""
    pooled = x_bt[0:S, :]
    for b in range(1, B):
        pooled = jnp.maximum(pooled, x_bt[b * S:(b + 1) * S, :])
    y_ref[...] = (jnp.dot(jnp.tanh(pooled), wl_ref[...], preferred_element_type=jnp.float32)
                  + bl_ref[...])                                              # (S, 128)


# --------------------------------------- kernels -------------------------------------------
def _head_kernel(S, B, ids_ref, emb_ref, wl_ref, bl_ref, y_ref):
    x_bt = _gather_bt(ids_ref, emb_ref)                                       # (B*S, E)
    _head_from_x(x_bt, S, B, wl_ref, bl_ref, y_ref)


def _fused_kernel(S, B, ids_ref, emb_ref, wi_ref, wh_ref, bi_ref, bh_ref, wl_ref, bl_ref,
                  y_ref, h_ref):
    """Head + (faithful-mode) GRU recurrence in one kernel invocation."""
    H = wh_ref.shape[0]

    x_bt = _gather_bt(ids_ref, emb_ref)                                       # (B*S, E) in vregs
    _head_from_x(x_bt, S, B, wl_ref, bl_ref, y_ref)

    # ---- GRU: hoisted, gate-fused input projection, kept in vregs (no VMEM scratch) ----
    gi = jnp.dot(x_bt, wi_ref[...], preferred_element_type=jnp.float32) + bi_ref[...]  # (B*S, 3H)
    wh = wh_ref[...]
    bh_b = jnp.broadcast_to(bh_ref[...], (B, 3 * H))      # hoisted out of the unrolled loop
    h = jnp.zeros((B, H), jnp.float32)                    # zero initial hidden state

    for t in range(S):                                    # static unroll: all slices are static
        # rows {b*S + t} of the hoisted projection -> (B, 3H) for this step
        gi_t = jnp.concatenate([gi[b * S + t: b * S + t + 1, :] for b in range(B)], axis=0)
        gh = jnp.dot(h, wh, preferred_element_type=jnp.float32) + bh_b        # (B, 3H)
        s = gi_t + gh                                     # one full-width VPU add
        rz = jax.nn.sigmoid(s[:, :2 * H])                 # ONE EUP sigmoid for both r and z
        r = rz[:, :H]
        z = rz[:, H:2 * H]
        n = jnp.tanh(gi_t[:, 2 * H:] + r * gh[:, 2 * H:])  # PyTorch: n = tanh(gi_n + r*(Wh h + b_hh))
        h = (1.0 - z) * n + z * h

    h_ref[...] = h                                        # only the final state is emitted


# --------------------------------------- wrappers ------------------------------------------
def _vmem_spec():
    return pl.BlockSpec(memory_space=pltpu.MemorySpace.VMEM)


def _head_forward(ids_bt, p, S, B):
    V, E = p["embedding"].shape
    in_bytes = 4 * (ids_bt.size + V * E + E * LANE + LANE)
    out_bytes = 4 * S * LANE
    return pl.pallas_call(
        functools.partial(_head_kernel, S, B),
        out_shape=jax.ShapeDtypeStruct((S, LANE), jnp.float32),
        in_specs=[_vmem_spec() for _ in range(4)],
        out_specs=_vmem_spec(),
        cost_estimate=pl.CostEstimate(
            flops=2 * B * S * V * E + 2 * S * E * LANE,
            transcendentals=S * E,
            bytes_accessed=in_bytes + out_bytes),
    )(ids_bt, p["embedding"], p["wl_pad"], p["bl_pad"])


def _fused_forward(ids_bt, p, S, B):
    V, E = p["embedding"].shape
    H = p["hidden_dim"]
    in_bytes = 4 * (ids_bt.size + V * E + E * 3 * H + H * 3 * H + 2 * 3 * H + E * LANE + LANE)
    out_bytes = 4 * (S * LANE + B * H)
    flops = (2 * B * S * V * E             # one-hot gather matmul
             + 2 * S * E * LANE            # head matmul (lane-padded)
             + 2 * B * S * E * 3 * H       # hoisted gate-fused input projection
             + 2 * S * B * H * 3 * H)      # recurrence hidden matmuls
    return pl.pallas_call(
        functools.partial(_fused_kernel, S, B),
        out_shape=(jax.ShapeDtypeStruct((S, LANE), jnp.float32),   # lane-dense padded logits
                   jax.ShapeDtypeStruct((B, H), jnp.float32)),     # final hidden state only
        in_specs=[_vmem_spec() for _ in range(8)],
        out_specs=(_vmem_spec(), _vmem_spec()),
        cost_estimate=pl.CostEstimate(
            flops=flops,
            transcendentals=S * E + S * (2 * B * H + B * H),
            bytes_accessed=in_bytes + out_bytes),
    )(ids_bt, p["embedding"], p["wi_f"], p["wh_f"], p["bi_f"], p["bh_f"],
      p["wl_pad"], p["bl_pad"])


def gru_classifier_forward(sentence, prepped, *, compute_gru=False):
    """Forward pass of GRUClassifier.

    compute_gru=False (default): the GRU recurrence is skipped entirely — the module discards
      its output, so y is identical and 100% of the recurrence is dead work.
    compute_gru=True: the GRU is run faithfully (fused into the same kernel as the head, final
      state only) and its result discarded, exactly like the PyTorch module.
    """
    S, B = sentence.shape
    # Batch-major flat token ids (row = b*S + t) so the head's batch max-pool is a VPU maximum
    # of two aligned (S, E) slabs.  Embedding gather happens inside the kernel.
    ids_bt = jnp.transpose(sentence).reshape(B * S, 1).astype(jnp.int32)
    # Dropout(p=0.5) on the embeddings: identity at inference.
    # TODO(synk): training-mode stochastic dropout not implemented (would need in-kernel PRNG).
    L = prepped["label_size"]
    if compute_gru:
        y_pad, _h_final = _fused_forward(ids_bt, prepped, S, B)   # h discarded, like the module
    else:
        y_pad = _head_forward(ids_bt, prepped, S, B)
    return y_pad[:, :L]                                           # (S, label_size)


# ------------------------------------ pure-JAX references ----------------------------------
def _gru_reference(x, raw):
    H = raw["w_hh"].shape[1]
    w_ih, w_hh, b_ih, b_hh = raw["w_ih"], raw["w_hh"], raw["b_ih"], raw["b_hh"]

    def cell(h, x_t):
        gi = x_t @ w_ih.T + b_ih
        gh = h @ w_hh.T + b_hh
        r = jax.nn.sigmoid(gi[:, :H] + gh[:, :H])
        z = jax.nn.sigmoid(gi[:, H:2 * H] + gh[:, H:2 * H])
        n = jnp.tanh(gi[:, 2 * H:] + r * gh[:, 2 * H:])
        h_new = (1.0 - z) * n + z * h
        return h_new, None

    h0 = jnp.zeros((x.shape[1], H), jnp.float32)
    h_final, _ = lax.scan(cell, h0, x)
    return h_final


# ----------------------------------------- main --------------------------------------------
if __name__ == "__main__":
    vocab_size = 50
    embedding_dim = 32
    hidden_dim = 32          # module implicitly requires E == H (hidden2label applied to embeddings)
    label_size = 4
    batch_size = 2
    seq_len = 8
    assert embedding_dim == hidden_dim

    key = jax.random.PRNGKey(0)
    ks = jax.random.split(key, 8)
    scale = 1.0 / (hidden_dim ** 0.5)
    raw = {
        "embedding": jax.random.normal(ks[0], (vocab_size, embedding_dim), jnp.float32),
        "w_ih": jax.random.uniform(ks[1], (3 * hidden_dim, embedding_dim), jnp.float32, -scale, scale),
        "w_hh": jax.random.uniform(ks[2], (3 * hidden_dim, hidden_dim), jnp.float32, -scale, scale),
        "b_ih": jax.random.uniform(ks[3], (3 * hidden_dim,), jnp.float32, -scale, scale),
        "b_hh": jax.random.uniform(ks[4], (3 * hidden_dim,), jnp.float32, -scale, scale),
        "w_label": jax.random.uniform(ks[5], (label_size, hidden_dim), jnp.float32, -scale, scale),
        "b_label": jax.random.uniform(ks[6], (label_size,), jnp.float32, -scale, scale),
    }
    sentence = jax.random.randint(ks[7], (seq_len, batch_size), 0, vocab_size)  # (S, B) token ids

    prepped = prepare_params(raw)   # one-time weight fusion / transpose / padding

    # Fast path (dead GRU removed) and faithful path (fused GRU computed, then discarded).
    y_fast = gru_classifier_forward(sentence, prepped, compute_gru=False)
    y_faithful = gru_classifier_forward(sentence, prepped, compute_gru=True)
    jax.block_until_ready((y_fast, y_faithful))

    assert y_fast.shape == (seq_len, label_size)
    assert y_faithful.shape == (seq_len, label_size)
    assert bool(jnp.all(jnp.isfinite(y_fast))) and bool(jnp.all(jnp.isfinite(y_faithful)))

    # Kernel-vs-kernel head consistency: identical in-kernel math, so this is tight and catches
    # layout / fusion regressions.
    assert bool(jnp.allclose(y_fast, y_faithful, atol=1e-5, rtol=1e-5))

    # Pure-JAX reference for the head.  Tolerance is bounded by TPU default-precision matmuls
    # (bf16 passes) differing between the Pallas MXU dot and XLA's reference dot — not by the
    # kernel math, which is exact up to that rounding.
    x = prepped["embedding"][sentence]
    y_ref = jnp.max(jnp.tanh(x), axis=1) @ raw["w_label"].T + raw["b_label"]
    assert bool(jnp.allclose(y_fast, y_ref, atol=2e-2, rtol=2e-2))
    assert bool(jnp.allclose(y_faithful, y_ref, atol=2e-2, rtol=2e-2))

    # Verify the fused/optimized GRU numerics against a pure-JAX PyTorch-style reference.
    ids_bt = jnp.transpose(sentence).reshape(batch_size * seq_len, 1).astype(jnp.int32)
    _, h_kernel = _fused_forward(ids_bt, prepped, seq_len, batch_size)
    h_ref = _gru_reference(x, raw)
    jax.block_until_ready(h_kernel)
    assert bool(jnp.allclose(h_kernel, h_ref, atol=2e-2, rtol=2e-2))

    print("KERNEL_OK")
</pallas_src>

<mosaic_0001>
module attributes {stable_mosaic.version = 11 : i64} {
  func.func @_head_kernel(%arg0: memref<16x1xi32, #tpu.memory_space<vmem>>, %arg1: memref<50x32xf32, #tpu.memory_space<vmem>>, %arg2: memref<32x128xf32, #tpu.memory_space<vmem>>, %arg3: memref<1x128xf32, #tpu.memory_space<vmem>>, %arg4: memref<8x128xf32, #tpu.memory_space<vmem>>) attributes {dimension_semantics = [], scalar_prefetch = 0 : i64, scratch_operands = 0 : i64, tpu.core_type = #tpu.core_type<tc>} {
    %c0 = arith.constant 0 : index
    %c0_0 = arith.constant 0 : index
    %0 = vector.load %arg0[%c0, %c0_0] : memref<16x1xi32, #tpu.memory_space<vmem>>, vector<16x1xi32>
    %1 = tpu.iota {dimensions = array<i32: 1>} : vector<16x50xi32>
    %2 = vector.broadcast %0 : vector<16x1xi32> to vector<16x50xi32>
    %3 = arith.cmpi eq, %2, %1 : vector<16x50xi32>
    %4 = arith.extui %3 : vector<16x50xi1> to vector<16x50xi32>
    %5 = arith.sitofp %4 : vector<16x50xi32> to vector<16x50xf32>
    %c0_1 = arith.constant 0 : index
    %c0_2 = arith.constant 0 : index
    %6 = vector.load %arg1[%c0_1, %c0_2] : memref<50x32xf32, #tpu.memory_space<vmem>>, vector<50x32xf32>
    %cst = arith.constant dense<0.000000e+00> : vector<16x32xf32>
    %7 = tpu.matmul %5, %6, %cst {dimension_numbers = #tpu.dot_dimension_numbers<[1], [0], [0], [1], [0, 0, 1, 1], [], []>} : vector<16x50xf32>, vector<50x32xf32>, vector<16x32xf32> -> vector<16x32xf32>
    %8 = vector.extract_strided_slice %7 {offsets = [0, 0], sizes = [8, 32], strides = [1, 1]} : vector<16x32xf32> to vector<8x32xf32>
    %9 = vector.extract_strided_slice %7 {offsets = [8, 0], sizes = [8, 32], strides = [1, 1]} : vector<16x32xf32> to vector<8x32xf32>
    %10 = arith.maximumf %8, %9 : vector<8x32xf32>
    %11 = math.tanh %10 : vector<8x32xf32>
    %c0_3 = arith.constant 0 : index
    %c0_4 = arith.constant 0 : index
    %12 = vector.load %arg2[%c0_3, %c0_4] : memref<32x128xf32, #tpu.memory_space<vmem>>, vector<32x128xf32>
    %cst_5 = arith.constant dense<0.000000e+00> : vector<8x128xf32>
    %13 = tpu.matmul %11, %12, %cst_5 {dimension_numbers = #tpu.dot_dimension_numbers<[1], [0], [0], [1], [0, 0, 1, 1], [], []>} : vector<8x32xf32>, vector<32x128xf32>, vector<8x128xf32> -> vector<8x128xf32>
    %c0_6 = arith.constant 0 : index
    %c0_7 = arith.constant 0 : index
    %14 = vector.load %arg3[%c0_6, %c0_7] : memref<1x128xf32, #tpu.memory_space<vmem>>, vector<1x128xf32>
    %15 = vector.broadcast %14 : vector<1x128xf32> to vector<8x128xf32>
    %16 = arith.addf %13, %15 : vector<8x128xf32>
    %c0_8 = arith.constant 0 : index
    %c0_9 = arith.constant 0 : index
    %17 = vector.load %arg4[%c0_8, %c0_9] : memref<8x128xf32, #tpu.memory_space<vmem>>, vector<8x128xf32>
    tpu.vector_store %arg4[%c0_8, %c0_9], %16 {strides = array<i32>} : memref<8x128xf32, #tpu.memory_space<vmem>>, vector<8x128xf32>,
    return
  }
}

</mosaic_0001>

<bundles_post_ra>
// kernel: tpu_custom_call.1
= control target key start
LH: loop header
LB: loop body
LE: loop exit
PB: predicated region body
PF: predicated region fallthrough
CT: control target
= control target key end

     0   :  { %v328_v2 = vmov 0   ;;  %s412_s0 = inlined_call_operand.vmem [shape: s32[16,1], index: 0, kind: input, shape index: {}]   ;;  %s413_s1 = inlined_call_operand.vmem [shape: f32[50,32], index: 1, kind: input, shape index: {}]   ;;  %s414_s2 = inlined_call_operand.vmem [shape: f32[32,128], index: 2, kind: input, shape index: {}]   ;;  %s415_s3 = inlined_call_operand.vmem [shape: f32[1,128], index: 3, kind: input, shape index: {}]   ;;  %s416_s4 = inlined_call_operand.hbm [shape: f32[8,128], index: 4, kind: output, shape index: {}]  }
   0x1   :  { %v18_v0 = vld [vmem:[%s412_s0] sm:$0xff]  ;;  %301 = vset.pattern.permute.xlu0 %v328_v2  ;;  %v35_v3 = vld [vmem:[%s413_s1 + $0x8] sm:$0xff]  ;;  %v36_v4 = vld [vmem:[%s413_s1 + $0x10] sm:$0xff] }
   0x2   :  { %v34_v1 = vld [vmem:[%s413_s1] sm:$0xff]  ;;  %v37_v5 = vld [vmem:[%s413_s1 + $0x18] sm:$0xff]  ;;  %23 = vperm.xlu0 %301, %v18_v0  }
   0x3   :  { %v278_v6 = vpack.c.bf16 %v35_v3, %v34_v1  ;;  %v282_v7 = vpack.c.bf16 %v37_v5, %v36_v4 }
   0x4   :  { %9 = vsyncpa [#allocation3], 0  ;;  %v19_v8 = vld [vmem:[%s412_s0 + $0x8] sm:$0xff]  ;;  %v38_v9 = vld [vmem:[%s413_s1 + $0x20] sm:$0xff]  ;;  %vm48_vm0 = vcmask 1041408   ;;  %v20_v13 = vlaneseq  ;;  %vm41_vm1 = vcmask 408576  }
   0x5   :  { %v39_v10 = vld [vmem:[%s413_s1 + $0x28] sm:$0xff]  ;;  %279 = vmatprep.subr.bf16.mxu0 %v278_v6  ;;  %v40_v12 = vld [vmem:[%s413_s1 + $0x30] sm:$0x3]  ;;  %v329_v16 = vmov 0.0   ;;  %v129_v20 = vld [vmem:[%s414_s2] sm:$0xff]  ;;  %v330_v23 = vmov 0.0|0.0  }
   0x6   :  { %281 = vmatpush3.bf16.msra.mxu0 %v278_v6  ;;  %26 = vperm.xlu0 %301, %v19_v8   ;;  %v286_v11 = vpack.c.bf16 %v39_v10, %v38_v9  ;;  %v21_v14 = vand.u32 127, %v20_v13  ;;  %v130_v21 = vld [vmem:[%s414_s2 + $0x8] sm:$0xff]  ;;  %v131_v22 = vld [vmem:[%s414_s2 + $0x10] sm:$0xff]  ;;  %v132_v25 = vld [vmem:[%s414_s2 + $0x18] sm:$0xff]  ;;  %vm331_vm4 = vmmov 0   ;;  %vm140_vm5 = vcmask 261120  }
   0x7   :  { %283 = vmatprep.subr.bf16.mxu0 %v282_v7  ;;  %290 = vmatprep.subr.bf16.mxu1 %v330_v23  ;;  %v291_v24 = vpack.c.bf16 %v130_v21, %v129_v20  ;;  %v294_v26 = vpack.c.bf16 %v132_v25, %v131_v22  ;;  %v234_v31 = vld [vmem:[%s415_s3] ss:$0 sm:$0xff]  ;;  %s332_s15 = smov [#allocation2]  }
   0x8   :  { %275 = vmatprep.mubr.msk.f32.mxu1 %vm331_vm4, %v329_v16  ;;  %s221_s16 = sshll.u32 %s332_s15, 4  ;;  %s222_s16 = int_to_ptr.vmem [resolvable:$true] %s221_s16 }
   0x9   :  { %292 = vmatpush3.bf16.msra.mxu1 %v291_v24  ;;  %s304_s2 = scalar_lea.vmem %s222_s16, 128  ;;  %p309_p1 = scmp.lt.s32.totalorder %s222_s16, %s222_s16 }
   0xa   :  { %285 = vmatpush3.bf16.msra.mxu0 %v282_v7  ;;  %293 = vmatprep.subr.bf16.mxu1 %v330_v23  ;;  %p305_p0 = scmp.ne.s32.totalorder %s222_s16, %s304_s2  ;;  %p310_p2 = scmp.lt.s32.totalorder %s304_s2, %s304_s2 }
   0xb   :  { %287 = vmatprep.subr.bf16.mxu0 %v286_v11 }
   0xc   :  { %p311_p3 = por %p310_p2, %p309_p1 }
   0xd   :  { %295 = vmatpush3.bf16.msra.mxu1 %v294_v26 }
   0xe   :  { %289 = vmatpush3.bf16.msra.mxu0 %v286_v11  ;;  %p312_p4 = pnand %p311_p3, %p305_p0 }
   0xf   :  { %262 = vmatprep.subr.msk.mxu0 %vm48_vm0, %v40_v12 }
  0x12   :  { %263 = vmatpush3.msk.msra.mxu0 %vm48_vm0, %v40_v12 }
  0x81   :  { %v24_v15 = vpop.permute.xlu0 %23 }
  0x82   :  { %vm28_vm2 = vcmp.eq.s32.totalorder %v24_v15, %v21_v14 }
  0x83   :  { %v229_v17 = vsel %vm28_vm2, 1.0, %v329_v16 }
  0x84   :  { %264 = vmatprep.mubr.msk.f32.mxu0 %vm41_vm1, %v229_v17 }
  0x85   :  { %v27_v18 = vpop.permute.xlu0 %26 }
  0x86   :  { %vm29_vm3 = vcmp.eq.s32.totalorder %v27_v18, %v21_v14 }
  0x87   :  { %v230_v19 = vsel %vm29_vm3, 1.0, %v329_v16 }
  0x88   :  { %265 = vmatmul.mubr.msk.f32.vlgmr.msra.gmra.mrb[0].mxu0 %vm41_vm1, %v230_v19 }
 0x15b   :  { %v266_v27 = vpop.f32.mrb[0].mxu0 }
 0x15c   :  { %v118_v28 = vpop.f32.mrb[1].mxu0 }
 0x15d   :  { %v127_v29 = vmax.f32 %v118_v28, %v266_v27 }
 0x15f   :  { %302 = vtanh.f32 %v127_v29 }
 0x169   :  { %v303_v30 = vpop.eup %302 }
 0x16a   :  { %276 = vmatmul.mubr.msk.f32.vlgmr.msra.gmra.mrb[0].mxu1 %vm140_vm5, %v303_v30 }
 0x23d   :  { %v210_v32 = vpop.f32.mrb[0].mxu1 }
 0x23e   :  { %v211_v33 = vadd.f32 %v234_v31, %v210_v32  ;;  %v277_v34 = vpop.f32.mrb[1].mxu1 }
 0x240   :  { %214 = vst [vmem:[#allocation2] sm:$0xff] %v211_v33 }
 0x241   :  { %315 = shalt.err (!%p312_p4)
}
 0x242   :  { %s316_s19 = scalar_lea.hbm %s416_s4, 128 }
 0x243   :  { %p317_p5 = scmp.ne.s32.totalorder %s416_s4, %s316_s19  ;;  %p320_p6 = scmp.lt.u32.totalorder %s316_s19, %s416_s4 }
 0x245   :  { %p322_p7 = pnand %p320_p6, %p317_p5 }
 0x247   :  { %325 = shalt.err (!%p322_p7)
}
 0x248   :  { %224 = dma.vmem_to_hbm [thread:$0]  %s222_s16, 128, %s416_s4, [#allocation3]  }
 0x249   :  { %326 = dma.done.wait [#allocation3], 128  }
 0x24a   :  { %327 = vsyncadd [#allocation3], 4294967168 }
 0x24b   :  { %228 = vsyncpa [#allocation3], 1 }

</bundles_post_ra>
